<compile_context>
chip_gen: v5e
topology: v5e:2x2
jax: 0.10.0
libtpu: 0.0.40
codegen_flags: <defaults>
</compile_context>

<pallas_src>
import functools

import jax
import jax.numpy as jnp
from jax.experimental import pallas as pl
from jax.experimental.pallas import tpu as pltpu

_LANE = 128
_SUB = 8
_BLOCK_ROWS = 4096                  # 4096 * 128 * 4 B = 2 MiB per f32 block
_FAST_PATH_MAX_ELEMS = 512 * 1024   # whole-array-in-VMEM single-pass path
_VMEM_LIMIT = 32 * 1024 * 1024      # safe on v5e/v6e (128 MiB) and v7x (64 MiB)
_EPS = 1e-14


def _valid_mask(shape, row_offset, n_valid):
    """True for elements whose flat index (row*128 + lane) is < n_valid.

    Written without the row*128 product so it cannot overflow int32."""
    full_rows = n_valid // _LANE
    rem = n_valid % _LANE
    ridx = jax.lax.broadcasted_iota(jnp.int32, shape, 0) + row_offset
    lidx = jax.lax.broadcasted_iota(jnp.int32, shape, 1)
    return (ridx < full_rows) | ((ridx == full_rows) & (lidx < rem))


def _stretch_small_kernel(x_ref, o_ref, *, n_valid, needs_mask):
    """Single-pass fast path: the whole array is one VMEM block."""
    x = x_ref[...].astype(jnp.float32)
    if needs_mask:
        valid = _valid_mask(x.shape, 0, n_valid)
        mn = jnp.min(jnp.where(valid, x, jnp.inf))
        mx = jnp.max(jnp.where(valid, x, -jnp.inf))
    else:
        mn = jnp.min(x)
        mx = jnp.max(x)
    inv = 1.0 / (mx - mn + jnp.float32(_EPS))
    o_ref[...] = ((x - mn) * inv).astype(o_ref.dtype)


def _minmax_kernel(x_ref, pmin_ref, pmax_ref, *, block_rows, n_valid, needs_mask):
    """Pass 1: per-lane running min/max carried in the resident (1, 128) outputs."""
    i = pl.program_id(0)

    @pl.when(i == 0)
    def _():
        pmin_ref[...] = jnp.full((1, _LANE), jnp.inf, dtype=jnp.float32)
        pmax_ref[...] = jnp.full((1, _LANE), -jnp.inf, dtype=jnp.float32)

    x = x_ref[...].astype(jnp.float32)
    if needs_mask:
        valid = _valid_mask(x.shape, i * block_rows, n_valid)
        x_min = jnp.where(valid, x, jnp.inf)
        x_max = jnp.where(valid, x, -jnp.inf)
    else:
        x_min = x
        x_max = x
    pmin_ref[...] = jnp.minimum(pmin_ref[...], jnp.min(x_min, axis=0, keepdims=True))
    pmax_ref[...] = jnp.maximum(pmax_ref[...], jnp.max(x_max, axis=0, keepdims=True))


def _normalize_kernel(stats_ref, x_ref, o_ref):
    """Pass 2: out = (x - min) * inv, with (min, inv) scalars read from SMEM."""
    mn = stats_ref[0]
    inv = stats_ref[1]
    o_ref[...] = ((x_ref[...].astype(jnp.float32) - mn) * inv).astype(o_ref.dtype)


def stretch_values(img):
    """JAX/Pallas equivalent of StretchValues.forward (returns a new array)."""
    orig_shape = img.shape
    out_dtype = img.dtype if jnp.issubdtype(img.dtype, jnp.floating) else jnp.float32

    x = img.reshape(-1)                       # free: contiguous flatten
    n = x.shape[0]
    if n == 0:
        return img.astype(out_dtype)

    # Lane-dense (rows, 128) layout.  Reshape is free when n % 128 == 0; otherwise a
    # minimal zero-pad (masked inside the kernels) plus a trailing slice.
    # TODO(synk): for n % 128 != 0 the pad and the final slice each cost one array copy.
    rows = pl.cdiv(n, _LANE)
    padded_n = rows * _LANE
    lane_padded = padded_n != n
    if lane_padded:
        x = jnp.pad(x, (0, padded_n - n))
    x2 = x.reshape(rows, _LANE)

    if n <= _FAST_PATH_MAX_ELEMS:
        # ---- Fast path: load once, reduce, normalize, store (2N HBM traffic). ----
        out2 = pl.pallas_call(
            functools.partial(_stretch_small_kernel, n_valid=n, needs_mask=lane_padded),
            out_shape=jax.ShapeDtypeStruct((rows, _LANE), out_dtype),
            grid=(1,),
            in_specs=[pl.BlockSpec((rows, _LANE), lambda i: (0, 0))],
            out_specs=pl.BlockSpec((rows, _LANE), lambda i: (0, 0)),
            compiler_params=pltpu.CompilerParams(
                dimension_semantics=("arbitrary",),
                vmem_limit_bytes=_VMEM_LIMIT),
        )(x2)
    else:
        block_rows = min(_BLOCK_ROWS, ((rows + _SUB - 1) // _SUB) * _SUB)
        n_tiles = pl.cdiv(rows, block_rows)
        needs_mask = lane_padded or (rows % block_rows != 0)

        # ---- Pass 1: global min / max (sequential accumulator grid). ----
        pmin, pmax = pl.pallas_call(
            functools.partial(_minmax_kernel, block_rows=block_rows,
                              n_valid=n, needs_mask=needs_mask),
            out_shape=(jax.ShapeDtypeStruct((1, _LANE), jnp.float32),
                       jax.ShapeDtypeStruct((1, _LANE), jnp.float32)),
            grid=(n_tiles,),
            in_specs=[pl.BlockSpec((block_rows, _LANE), lambda i: (i, 0))],
            out_specs=(pl.BlockSpec((1, _LANE), lambda i: (0, 0)),
                       pl.BlockSpec((1, _LANE), lambda i: (0, 0))),
            compiler_params=pltpu.CompilerParams(
                dimension_semantics=("arbitrary",),
                vmem_limit_bytes=_VMEM_LIMIT),
        )(x2)

        # Scalar epilogue done exactly once (tiny XLA op on (1,128) partials).
        mn = jnp.min(pmin)
        mx = jnp.max(pmax)
        inv = jnp.float32(1.0) / (mx - mn + jnp.float32(_EPS))
        stats = jnp.stack([mn, inv]).astype(jnp.float32)

        # ---- Pass 2: normalize; "parallel" grid (megacore-shardable on v7x). ----
        out2 = pl.pallas_call(
            _normalize_kernel,
            out_shape=jax.ShapeDtypeStruct((rows, _LANE), out_dtype),
            grid=(n_tiles,),
            in_specs=[pl.BlockSpec(memory_space=pltpu.MemorySpace.SMEM),
                      pl.BlockSpec((block_rows, _LANE), lambda i: (i, 0))],
            out_specs=pl.BlockSpec((block_rows, _LANE), lambda i: (i, 0)),
            compiler_params=pltpu.CompilerParams(
                dimension_semantics=("parallel",),
                vmem_limit_bytes=_VMEM_LIMIT),
        )(stats, x2)

    out = out2.reshape(-1)
    if lane_padded:
        out = out[:n]
    return out.reshape(orig_shape)


if __name__ == "__main__":
    key = jax.random.PRNGKey(0)

    # Small 4-D image batch (fast path): values not already in [0, 1].
    img = jax.random.uniform(key, (2, 4, 16, 16), dtype=jnp.float32) * 5.0 - 2.0
    out = jax.block_until_ready(stretch_values(img))

    ref = img - jnp.min(img)
    ref = ref / (jnp.max(ref) + 1e-14)
    assert out.shape == img.shape
    assert out.dtype == img.dtype
    assert bool(jnp.allclose(out, ref, atol=1e-6, rtol=1e-6))

    # Larger, ragged-sized input to exercise the tiled two-pass path + tail masking.
    img2 = jax.random.uniform(jax.random.PRNGKey(1), (2, 3, 500, 333),
                              dtype=jnp.float32) * 7.0 - 3.0
    out2 = jax.block_until_ready(stretch_values(img2))
    ref2 = img2 - jnp.min(img2)
    ref2 = ref2 / (jnp.max(ref2) + 1e-14)
    assert out2.shape == img2.shape
    assert out2.dtype == img2.dtype
    assert bool(jnp.allclose(out2, ref2, atol=1e-6, rtol=1e-6))

    print("KERNEL_OK")
</pallas_src>

<mosaic_0001>
module attributes {stable_mosaic.version = 11 : i64} {
  func.func @_stretch_small_kernel(%arg0: i32, %arg1: memref<16x128xf32, #tpu.memory_space<vmem>>, %arg2: memref<16x128xf32, #tpu.memory_space<vmem>>) attributes {dimension_semantics = [#tpu.dimension_semantics<arbitrary>], iteration_bounds = array<i64: 1>, scalar_prefetch = 0 : i64, scratch_operands = 0 : i64, tpu.core_type = #tpu.core_type<tc>, window_params = [{pipeline_mode = #tpu.pipeline_mode<synchronous>, transform_indices = @transform_0, window_bounds = array<i64: 16, 128>}, {pipeline_mode = #tpu.pipeline_mode<synchronous>, transform_indices = @transform_1, window_bounds = array<i64: 16, 128>}]} {
    %c0 = arith.constant 0 : index
    %c0_0 = arith.constant 0 : index
    %0 = vector.load %arg1[%c0, %c0_0] : memref<16x128xf32, #tpu.memory_space<vmem>>, vector<16x128xf32>
    %1 = vector.shape_cast %0 : vector<16x128xf32> to vector<1x16x128xf32>
    %cst = arith.constant dense<0x7F800000> : vector<1xf32>
    %2 = vector.multi_reduction <minimumf>, %1, %cst [1, 2] : vector<1x16x128xf32> to vector<1xf32>
    %3 = vector.shape_cast %2 : vector<1xf32> to vector<1x1x1xf32>
    %4 = vector.extract %3[0, 0, 0] : f32 from vector<1x1x1xf32>
    %5 = vector.shape_cast %0 : vector<16x128xf32> to vector<1x16x128xf32>
    %cst_1 = arith.constant dense<0xFF800000> : vector<1xf32>
    %6 = vector.multi_reduction <maximumf>, %5, %cst_1 [1, 2] : vector<1x16x128xf32> to vector<1xf32>
    %7 = vector.shape_cast %6 : vector<1xf32> to vector<1x1x1xf32>
    %8 = vector.extract %7[0, 0, 0] : f32 from vector<1x1x1xf32>
    %9 = arith.subf %8, %4 : f32
    %cst_2 = arith.constant 9.99999982E-15 : f32
    %10 = arith.addf %9, %cst_2 : f32
    %cst_3 = arith.constant 1.000000e+00 : f32
    %11 = arith.divf %cst_3, %10 : f32
    %12 = vector.broadcast %4 : f32 to vector<16x128xf32>
    %13 = arith.subf %0, %12 : vector<16x128xf32>
    %14 = vector.broadcast %11 : f32 to vector<16x128xf32>
    %15 = arith.mulf %13, %14 : vector<16x128xf32>
    %c0_4 = arith.constant 0 : index
    %c0_5 = arith.constant 0 : index
    %16 = vector.load %arg2[%c0_4, %c0_5] : memref<16x128xf32, #tpu.memory_space<vmem>>, vector<16x128xf32>
    tpu.vector_store %arg2[%c0_4, %c0_5], %15 {strides = array<i32>} : memref<16x128xf32, #tpu.memory_space<vmem>>, vector<16x128xf32>,
    return
  }
  func.func @transform_0(%arg0: i32) -> (i32, i32) {
    %c0_i32 = arith.constant 0 : i32
    %c0_i32_0 = arith.constant 0 : i32
    %c0_i32_1 = arith.constant 0 : i32
    return %c0_i32, %c0_i32_0 : i32, i32
  }
  func.func @transform_1(%arg0: i32) -> (i32, i32) {
    %c0_i32 = arith.constant 0 : i32
    %c0_i32_0 = arith.constant 0 : i32
    %c0_i32_1 = arith.constant 0 : i32
    return %c0_i32, %c0_i32_0 : i32, i32
  }
}

</mosaic_0001>

<bundles_post_ra>
// kernel: tpu_custom_call.1
= control target key start
LH: loop header
LB: loop body
LE: loop exit
PB: predicated region body
PF: predicated region fallthrough
CT: control target
= control target key end

     0   :  { %6 = vsyncpa [#allocation3], 0  ;;  %s182_s0 = inlined_call_operand.hbm [shape: f32[16,128], index: 0, kind: input, shape index: {}]   ;;  %s183_s1 = inlined_call_operand.hbm [shape: f32[16,128], index: 1, kind: output, shape index: {}]  }
   0x1   :  { %7 = vsyncpa [#allocation4], 0  ;;  %s12_s8 = sshll.u32 %s182_s0, 4  ;;  %s156_s9 = smov [#allocation2]   ;;  %s13_s8 = int_to_ptr.hbm [resolvable:$true] %s12_s8 }
   0x2   :  { %s14_s10 = sshll.u32 %s156_s9, 4  ;;  %s157_s11 = smov 128   ;;  %s15_s10 = int_to_ptr.vmem [resolvable:$true] %s14_s10 }
   0x3   :  { %s158_s12 = smov 8  }
   0x4   :  { %20 = dma.hbm_to_vmem [thread:$0]  %s13_s8, 256, %s15_s10, [#allocation3], %s157_s11, %s157_s11, %s158_s12  }
   0x5   :  { %152 = dma.done.wait [#allocation3], 256  }
   0x6   :  { %153 = vsyncadd [#allocation3], 4294967040  ;;  %v25_v0 = vld [vmem:[#allocation2] sm:$0xff]  ;;  %v26_v1 = vld [vmem:[#allocation2 + $0x8] sm:$0xff]  ;;  %s159_s16 = smov [#allocation5]   ;;  %s79_s21 = sshll.u32 %s183_s1, 4  ;;  %s80_s21 = int_to_ptr.hbm [resolvable:$true] %s79_s21 }
   0x7   :  { %v27_v2 = vmin.f32 %v25_v0, %v26_v1  ;;  %v37_v3 = vmax.f32 %v25_v0, %v26_v1  ;;  %s77_s17 = sshll.u32 %s159_s16, 4  ;;  %s78_s17 = int_to_ptr.vmem [resolvable:$true] %s77_s17 }
   0x9   :  { %28 = vmin.xlane.f32.xlu0 %v27_v2 }
  0x11   :  { %38 = vmax.xlane.f32.xlu0 %v37_v3 }
  0x7c   :  { %v29_v4 = vpop.xlane.xlu0 %28 }
  0x7d   :  { %v30_v5 = vrot.slane %v29_v4, 4 }
  0x7f   :  { %v31_v6 = vmin.f32 %v29_v4, %v30_v5 }
  0x81   :  { %v32_v7 = vrot.slane %v31_v6, 2 }
  0x83   :  { %v33_v8 = vmin.f32 %v31_v6, %v32_v7 }
  0x84   :  { %v39_v9 = vpop.xlane.xlu0 %38 }
  0x85   :  { %v40_v10 = vrot.slane %v39_v9, 4  ;;  %v34_v11 = vrot.slane %v33_v8, 1 }
  0x87   :  { %v41_v12 = vmax.f32 %v39_v9, %v40_v10  ;;  %v35_v13 = vmin.f32 %v33_v8, %v34_v11 }
  0x89   :  { %v42_v14 = vrot.slane %v41_v12, 2  ;;  %92 = vpush %v35_v13 }
  0x8b   :  { %v43_v15 = vmax.f32 %v41_v12, %v42_v14 }
  0x8d   :  { %v44_v16 = vrot.slane %v43_v15, 1 }
  0x8f   :  { %v45_v17 = vmax.f32 %v43_v15, %v44_v16 }
  0x91   :  { %94 = vpush %v45_v17 }
  0xba   :  { %s93_s0 = spop %92 }
  0xbb   :  { %v65_v29 = vstv %s93_s0 }
  0xbc   :  { %v66_v30 = vsub.f32 %v25_v0, %v65_v29  ;;  %v67_v31 = vsub.f32 %v26_v1, %v65_v29 }
  0xc2   :  { %s95_s13 = spop %94 }
  0xc3   :  { %s47_s14 = ssub.f32 %s95_s13, %s93_s0 }
  0xc5   :  { %s48_s15 = sadd.f32 1e-14, %s47_s14 }
  0xc7   :  { %v49_v18 = vstv %s48_s15 }
  0xc8   :  { %102 = vrcp.f32 %v49_v18  ;;  %v61_v22 = vand.u32 2147483648, %v49_v18  ;;  %v59_v24 = vand.u32 2147483647, %v49_v18  ;;  %vm55_vm1 = vweird.f32 %v49_v18 }
  0xca   :  { %v62_v26 = vor.u32 1.1754944e-38, %v61_v22  ;;  %vm60_vm3 = vcmp.eq.f32.partialorder %v59_v24, 8.507059e+37 }
  0xce   :  { %v103_v19 = vpop.eup %102 }
  0xcf   :  { %v51_v20 = vmul.f32 %v103_v19, %v49_v18  ;;  %vm56_vm0 = vweird.f32 %v103_v19 }
  0xd0   :  { %vm57_vm2 = vmor %vm55_vm1, %vm56_vm0 }
  0xd1   :  { %v52_v21 = vsub.f32 1.0, %v51_v20 }
  0xd3   :  { %v53_v23 = vmul.f32 %v103_v19, %v52_v21 }
  0xd5   :  { %v54_v25 = vadd.f32 %v103_v19, %v53_v23 }
  0xd7   :  { %v58_v27 = vsel %vm57_vm2, %v103_v19, %v54_v25 }
  0xd8   :  { %v63_v28 = vsel %vm60_vm3, %v62_v26, %v58_v27 }
  0xd9   :  { %96 = vpush %v63_v28 }
 0x10a   :  { %s97_s18 = spop %96 }
 0x10b   :  { %v68_v32 = vstv %s97_s18 }
 0x10c   :  { %v69_v33 = vmul.f32 %v68_v32, %v66_v30  ;;  %v70_v34 = vmul.f32 %v68_v32, %v67_v31 }
 0x10e   :  { %71 = vst [vmem:[#allocation5] sm:$0xff] %v69_v33 }
 0x10f   :  { %72 = vst [vmem:[#allocation5 + $0x8] sm:$0xff] %v70_v34 }
 0x110   :  { %85 = dma.vmem_to_hbm [thread:$0]  %s78_s17, 256, %s80_s21, [#allocation4], %s157_s11, %s157_s11, %s158_s12  }
 0x111   :  { %154 = dma.done.wait [#allocation4], 256  }
 0x112   :  { %155 = vsyncadd [#allocation4], 4294967040 }
 0x113   :  { %90 = vsyncpa [#allocation3], 1 }
 0x114   :  { %91 = vsyncpa [#allocation4], 1 }

</bundles_post_ra>
